<compile_context>
chip_gen: v6e
topology: v6e:2x2x1
jax: 0.10.0
libtpu: 0.0.40
codegen_flags: <defaults>
</compile_context>

<pallas_src>
import functools

import jax
import jax.numpy as jnp
from jax.experimental import pallas as pl
from jax.experimental.pallas import tpu as pltpu


def _make_policy_kernel(matmul_dtype):
    def policy_net_kernel(x_ref, p1_ref, p2_ref, out_ref):
        # Packed params: p1 = [w1; b1] (IN+1, H), p2 = [w2; b2] (H+1, O).
        p1 = p1_ref[...]
        p2 = p2_ref[...]
        w1, b1 = p1[:-1, :], p1[-1:, :]
        w2, b2 = p2[:-1, :], p2[-1:, :]

        x = x_ref[...]

        # fc1 + ReLU (MXU matmul, f32 accumulation; bias/ReLU stay f32)
        h = jnp.dot(x.astype(matmul_dtype), w1.astype(matmul_dtype),
                    preferred_element_type=jnp.float32)
        h = jnp.maximum(h + b1, 0.0)

        # fc2 + ReLU
        o = jnp.dot(h.astype(matmul_dtype), w2.astype(matmul_dtype),
                    preferred_element_type=jnp.float32)
        o = jnp.maximum(o + b2, 0.0)

        # softmax over the last axis (F.softmax default dim for 2D input is dim=1)
        m = jnp.max(o, axis=-1, keepdims=True)
        e = jnp.exp(o - m)
        s = jnp.sum(e, axis=-1, keepdims=True)
        out_ref[...] = (e / s).astype(out_ref.dtype)

    return policy_net_kernel


def policy_net_forward(x, w1, b1, w2, b2, *, tb=512, matmul_dtype=jnp.float32):
    """Forward pass of PolicyNet via one Pallas kernel, batch-tiled over the grid.

    x : (B, IN) f32
    w1: (IN, H) f32, b1: (1, H) f32
    w2: (H, O)  f32, b2: (1, O) f32
    returns (B, O) f32 softmax probabilities.
    """
    B, IN = x.shape
    H = w1.shape[1]
    O = w2.shape[1]

    # Pick a batch tile: multiple of 8 (sublane), never bigger than the (padded) batch.
    tb = int(min(tb, max(8, pl.cdiv(B, 8) * 8)))
    Bp = pl.cdiv(B, tb) * tb
    if Bp != B:
        # Zero-pad extra rows; they produce valid (discarded) softmax rows.
        x = jnp.pad(x, ((0, Bp - B), (0, 0)))
    n_tiles = Bp // tb

    # Pack (w1,b1) and (w2,b2) into single slabs -> fewer DMA descriptors, and they
    # stay resident in VMEM across all batch tiles (constant index_map below).
    p1 = jnp.concatenate([w1, b1.reshape(1, H)], axis=0)  # (IN+1, H)
    p2 = jnp.concatenate([w2, b2.reshape(1, O)], axis=0)  # (H+1, O)

    cost = pl.CostEstimate(
        flops=2 * Bp * (IN * H + H * O) + 6 * Bp * (H + O),
        transcendentals=Bp * O,
        bytes_accessed=4 * (Bp * IN + Bp * O + p1.size + p2.size),
    )

    out = pl.pallas_call(
        _make_policy_kernel(matmul_dtype),
        out_shape=jax.ShapeDtypeStruct((Bp, O), jnp.float32),
        grid_spec=pltpu.PrefetchScalarGridSpec(
            num_scalar_prefetch=0,
            grid=(n_tiles,),
            in_specs=[
                # x streams one (tb, IN) tile per grid step.
                pl.BlockSpec((tb, IN), lambda i: (i, 0)),
                # Packed weights: constant block index -> DMA'd once, VMEM-resident.
                pl.BlockSpec(p1.shape, lambda i: (0, 0)),
                pl.BlockSpec(p2.shape, lambda i: (0, 0)),
            ],
            out_specs=pl.BlockSpec((tb, O), lambda i: (i, 0)),
        ),
        compiler_params=pltpu.CompilerParams(
            # Batch tiles are independent: parallel axis shards over v7x's 2 TCs.
            dimension_semantics=("parallel",),
        ),
        cost_estimate=cost,
    )(x, p1, p2)

    return out[:B]


def reference_forward(x, w1, b1, w2, b2):
    h = jnp.maximum(x @ w1 + b1, 0.0)
    o = jnp.maximum(h @ w2 + b2, 0.0)
    return jax.nn.softmax(o, axis=-1)


if __name__ == "__main__":
    # CartPole-like dims: input_dims=4 (observation), output_dims=2 (actions), fc_dims=32
    input_dims, output_dims, fc_dims = 4, 2, 32

    key = jax.random.PRNGKey(0)
    kx, k1, k2, k3, k4, kx2 = jax.random.split(key, 6)

    # Deterministic init mimicking nn.Linear's uniform(-1/sqrt(fan_in), 1/sqrt(fan_in))
    bound1 = 1.0 / jnp.sqrt(jnp.float32(input_dims))
    bound2 = 1.0 / jnp.sqrt(jnp.float32(fc_dims))
    w1 = jax.random.uniform(k1, (input_dims, fc_dims), jnp.float32, -bound1, bound1)
    b1 = jax.random.uniform(k2, (1, fc_dims), jnp.float32, -bound1, bound1)
    w2 = jax.random.uniform(k3, (fc_dims, output_dims), jnp.float32, -bound2, bound2)
    b2 = jax.random.uniform(k4, (1, output_dims), jnp.float32, -bound2, bound2)

    # --- small online-inference batch (single grid step, padded to 8 rows) ---
    x_small = jax.random.normal(kx, (2, input_dims), dtype=jnp.float32)
    out_small = jax.block_until_ready(policy_net_forward(x_small, w1, b1, w2, b2))
    ref_small = reference_forward(x_small, w1, b1, w2, b2)
    assert out_small.shape == (2, output_dims)
    assert jnp.allclose(out_small, ref_small, atol=1e-5, rtol=1e-5), (out_small, ref_small)
    assert jnp.allclose(jnp.sum(out_small, axis=-1), 1.0, atol=1e-5)

    # --- rollout-sized batch: exercises multi-step grid + padding + resident weights ---
    x_big = jax.random.normal(kx2, (1040, input_dims), dtype=jnp.float32)
    out_big = jax.block_until_ready(policy_net_forward(x_big, w1, b1, w2, b2, tb=256))
    ref_big = reference_forward(x_big, w1, b1, w2, b2)
    assert out_big.shape == (1040, output_dims)
    assert jnp.allclose(out_big, ref_big, atol=1e-5, rtol=1e-5)
    assert jnp.allclose(jnp.sum(out_big, axis=-1), 1.0, atol=1e-5)

    # --- optional bf16-MXU path (v5e/v6e rate win); vector math stays f32 ---
    out_bf16 = jax.block_until_ready(
        policy_net_forward(x_big, w1, b1, w2, b2, tb=256, matmul_dtype=jnp.bfloat16))
    assert jnp.allclose(out_bf16, ref_big, atol=5e-2)
    assert jnp.allclose(jnp.sum(out_bf16, axis=-1), 1.0, atol=1e-4)

    print("KERNEL_OK")
</pallas_src>

<mosaic_0001>
module attributes {stable_mosaic.version = 11 : i64} {
  func.func @policy_net_kernel(%arg0: i32, %arg1: memref<8x4xf32, #tpu.memory_space<vmem>>, %arg2: memref<5x32xf32, #tpu.memory_space<vmem>>, %arg3: memref<33x2xf32, #tpu.memory_space<vmem>>, %arg4: memref<8x2xf32, #tpu.memory_space<vmem>>) attributes {dimension_semantics = [#tpu.dimension_semantics<parallel>], iteration_bounds = array<i64: 1>, scalar_prefetch = 0 : i64, scratch_operands = 0 : i64, tpu.core_type = #tpu.core_type<tc>, window_params = [{transform_indices = @transform_0, window_bounds = array<i64: 8, 4>}, {pipeline_mode = #tpu.pipeline_mode<synchronous>, transform_indices = @transform_1, window_bounds = array<i64: 5, 32>}, {pipeline_mode = #tpu.pipeline_mode<synchronous>, transform_indices = @transform_2, window_bounds = array<i64: 33, 2>}, {transform_indices = @transform_3, window_bounds = array<i64: 8, 2>}]} {
    %c0 = arith.constant 0 : index
    %c0_0 = arith.constant 0 : index
    %0 = vector.load %arg2[%c0, %c0_0] : memref<5x32xf32, #tpu.memory_space<vmem>>, vector<5x32xf32>
    %c0_1 = arith.constant 0 : index
    %c0_2 = arith.constant 0 : index
    %1 = vector.load %arg3[%c0_1, %c0_2] : memref<33x2xf32, #tpu.memory_space<vmem>>, vector<33x2xf32>
    %2 = vector.extract_strided_slice %0 {offsets = [0, 0], sizes = [4, 32], strides = [1, 1]} : vector<5x32xf32> to vector<4x32xf32>
    %3 = vector.extract_strided_slice %0 {offsets = [4, 0], sizes = [1, 32], strides = [1, 1]} : vector<5x32xf32> to vector<1x32xf32>
    %4 = vector.extract_strided_slice %1 {offsets = [0, 0], sizes = [32, 2], strides = [1, 1]} : vector<33x2xf32> to vector<32x2xf32>
    %5 = vector.extract_strided_slice %1 {offsets = [32, 0], sizes = [1, 2], strides = [1, 1]} : vector<33x2xf32> to vector<1x2xf32>
    %c0_3 = arith.constant 0 : index
    %c0_4 = arith.constant 0 : index
    %6 = vector.load %arg1[%c0_3, %c0_4] : memref<8x4xf32, #tpu.memory_space<vmem>>, vector<8x4xf32>
    %cst = arith.constant dense<0.000000e+00> : vector<8x32xf32>
    %7 = tpu.matmul %6, %2, %cst {dimension_numbers = #tpu.dot_dimension_numbers<[1], [0], [0], [1], [0, 0, 1, 1], [], []>} : vector<8x4xf32>, vector<4x32xf32>, vector<8x32xf32> -> vector<8x32xf32>
    %8 = vector.broadcast %3 : vector<1x32xf32> to vector<8x32xf32>
    %9 = arith.addf %7, %8 : vector<8x32xf32>
    %cst_5 = arith.constant 0.000000e+00 : f32
    %10 = vector.broadcast %cst_5 : f32 to vector<8x32xf32>
    %11 = arith.maximumf %9, %10 : vector<8x32xf32>
    %cst_6 = arith.constant dense<0.000000e+00> : vector<8x2xf32>
    %12 = tpu.matmul %11, %4, %cst_6 {dimension_numbers = #tpu.dot_dimension_numbers<[1], [0], [0], [1], [0, 0, 1, 1], [], []>} : vector<8x32xf32>, vector<32x2xf32>, vector<8x2xf32> -> vector<8x2xf32>
    %13 = vector.broadcast %5 : vector<1x2xf32> to vector<8x2xf32>
    %14 = arith.addf %12, %13 : vector<8x2xf32>
    %cst_7 = arith.constant 0.000000e+00 : f32
    %15 = vector.broadcast %cst_7 : f32 to vector<8x2xf32>
    %16 = arith.maximumf %14, %15 : vector<8x2xf32>
    %cst_8 = arith.constant dense<0xFF800000> : vector<8xf32>
    %17 = vector.multi_reduction <maximumf>, %16, %cst_8 [1] : vector<8x2xf32> to vector<8xf32>
    %18 = vector.shape_cast %17 : vector<8xf32> to vector<8x1xf32>
    %19 = vector.broadcast %18 : vector<8x1xf32> to vector<8x2xf32>
    %20 = arith.subf %16, %19 : vector<8x2xf32>
    %21 = math.exp %20 : vector<8x2xf32>
    %cst_9 = arith.constant dense<0.000000e+00> : vector<8xf32>
    %22 = vector.multi_reduction <add>, %21, %cst_9 [1] : vector<8x2xf32> to vector<8xf32>
    %23 = vector.shape_cast %22 : vector<8xf32> to vector<8x1xf32>
    %24 = vector.broadcast %23 : vector<8x1xf32> to vector<8x2xf32>
    %25 = arith.divf %21, %24 : vector<8x2xf32>
    %c0_10 = arith.constant 0 : index
    %c0_11 = arith.constant 0 : index
    %26 = vector.load %arg4[%c0_10, %c0_11] : memref<8x2xf32, #tpu.memory_space<vmem>>, vector<8x2xf32>
    tpu.vector_store %arg4[%c0_10, %c0_11], %25 {strides = array<i32>} : memref<8x2xf32, #tpu.memory_space<vmem>>, vector<8x2xf32>,
    return
  }
  func.func @transform_0(%arg0: i32) -> (i32, i32) {
    %c0_i32 = arith.constant 0 : i32
    %c0_i32_0 = arith.constant 0 : i32
    return %arg0, %c0_i32 : i32, i32
  }
  func.func @transform_1(%arg0: i32) -> (i32, i32) {
    %c0_i32 = arith.constant 0 : i32
    %c0_i32_0 = arith.constant 0 : i32
    %c0_i32_1 = arith.constant 0 : i32
    return %c0_i32, %c0_i32_0 : i32, i32
  }
  func.func @transform_2(%arg0: i32) -> (i32, i32) {
    %c0_i32 = arith.constant 0 : i32
    %c0_i32_0 = arith.constant 0 : i32
    %c0_i32_1 = arith.constant 0 : i32
    return %c0_i32, %c0_i32_0 : i32, i32
  }
  func.func @transform_3(%arg0: i32) -> (i32, i32) {
    %c0_i32 = arith.constant 0 : i32
    %c0_i32_0 = arith.constant 0 : i32
    return %arg0, %c0_i32 : i32, i32
  }
}

</mosaic_0001>

<bundles_post_ra>
// kernel: tpu_custom_call.1
= control target key start
LH: loop header
LB: loop body
LE: loop exit
PB: predicated region body
PF: predicated region fallthrough
CT: control target
= control target key end

     0   :  { %vm29_vm0 = vcmask 1043456   ;;  %vm25_vm1 = vcmask 31744   ;;  %v233_v0 = vmov 0.0   ;;  %vm234_vm2 = vmmov 0   ;;  %s282_s1 = inlined_call_operand.vmem [shape: f32[5,32], index: 1, kind: input, shape index: {}]   ;;  %s283_s0 = inlined_call_operand.vmem [shape: f32[8,4], index: 0, kind: input, shape index: {}]   ;;  %s284_s2 = inlined_call_operand.vmem [shape: f32[33,2], index: 2, kind: input, shape index: {}]   ;;  %s285_s3 = inlined_call_operand.vmem [shape: f32[8,2], index: 3, kind: output, shape index: {}]  }
   0x1   :  { %211 = vmatprep.subr.mxu0 %v233_v0  ;;  %v14_v1 = vld [vmem:[%s282_s1] sm:$0x1f]  ;;  %213 = vmatprep.mubr.msk.f32.mxu0 %vm234_vm2, %v233_v0  ;;  %v18_v3 = vld [vmem:[%s284_s2 + $0x18] sm:$0xff]  ;;  %v17_v4 = vld [vmem:[%s284_s2 + $0x10] sm:$0xff]  ;;  %v21_v7 = vlaneseq  ;;  %vm108_vm3 = vcmask 261120   ;;  %vm183_vm4 = vcmask 15360  }
   0x2   :  { %v20_v2 = vld [vmem:[%s283_s0] sm:$0xff]  ;;  %212 = vmatpush3.msk.msra.mxu0 %vm29_vm0, %v14_v1  ;;  %216 = vmatprep.subr.mxu1 %v233_v0  ;;  %v16_v5 = vld [vmem:[%s284_s2 + $0x8] sm:$0xff] }
   0x3   :  { %214 = vmatmul.mubr.msk.f32.vlgmr.msra.gmra.mxu0 %vm25_vm1, %v20_v2  ;;  %217 = vmatpush3.msra.mxu1 %v18_v3  ;;  %v15_v6 = vld [vmem:[%s284_s2] sm:$0xff]  ;;  %v22_v8 = vshrl.u32 %v21_v7, 7 }
   0x4   :  { %218 = vmatprep.subr.mxu1 %v233_v0  ;;  %224 = vmatprep.mubr.msk.f32.mxu1 %vm234_vm2, %v233_v0  ;;  %v202_v15 = vld [vmem:[%s284_s2 + $0x20] ss:$0 sm:$0xff] }
   0x5   :  { %219 = vmatpush3.msra.mxu1 %v17_v4  ;;  %v23_v9 = vsub.s32 4, %v22_v8 }
   0x6   :  { %220 = vmatprep.subr.mxu1 %v233_v0 }
   0x7   :  { %221 = vmatpush3.msra.mxu1 %v16_v5  ;;  %v24_v10 = vrot.slane %v14_v1, %v23_v9 }
   0x8   :  { %222 = vmatprep.subr.mxu1 %v233_v0 }
   0x9   :  { %223 = vmatpush3.msra.mxu1 %v15_v6 }
  0xc3   :  { %v99_v11 = vpop.f32.mrf.mxu0 }
  0xc4   :  { %v100_v12 = vadd.f32 %v99_v11, %v24_v10 }
  0xc5   :  { %v215_v13 = vpop.f32.mrf.mxu0 }
  0xc6   :  { %v103_v14 = vmax.f32 %v100_v12, 0.0 }
  0xc8   :  { %225 = vmatmul.mubr.msk.f32.vlgmr.msra.gmra.mxu1 %vm108_vm3, %v103_v14 }
 0x188   :  { %v178_v16 = vpop.f32.mrf.mxu1 }
 0x189   :  { %v179_v17 = vadd.f32 %v202_v15, %v178_v16 }
 0x18a   :  { %v226_v18 = vpop.f32.mrf.mxu1 }
 0x18b   :  { %v182_v19 = vmax.f32 %v179_v17, 0.0 }
 0x18d   :  { %v184_v20 = vsel %vm183_vm4, %v182_v19, -inf }
 0x18e   :  { %185 = vmax.xlane.f32.xlu0 %v184_v20 }
 0x217   :  { %v186_v21 = vpop.xlane.xlu0 %185 }
 0x218   :  { %v187_v22 = vsub.f32 %v182_v19, %v186_v21 }
 0x21a   :  { %v188_v23 = vmul.f32 1.442695, %v187_v22 }
 0x21c   :  { %229 = vpow2.f32 %v188_v23 }
 0x229   :  { %v230_v24 = vpop.eup %229 }
 0x22a   :  { %v190_v25 = vsel %vm183_vm4, %v230_v24, 0.0 }
 0x22b   :  { %191 = vadd.xlane.f32.xlu0 %v190_v25 }
 0x2b4   :  { %v192_v26 = vpop.xlane.xlu0 %191 }
 0x2b5   :  { %231 = vrcp.f32 %v192_v26 }
 0x2c2   :  { %v232_v27 = vpop.eup %231 }
 0x2c3   :  { %v194_v28 = vmul.f32 %v232_v27, %v230_v24 }
 0x2c5   :  { %195 = vst.msk [vmem:[%s285_s3] sm:$0xff] %vm183_vm4, %v194_v28 }

</bundles_post_ra>
